<compile_context>
chip_gen: v7x
topology: tpu7x:2x2x1
jax: 0.10.0
libtpu: 0.0.40
codegen_flags: <defaults>
</compile_context>

<pallas_src>
import math

import jax
import jax.numpy as jnp
from jax.experimental import pallas as pl
from jax.experimental.pallas import tpu as pltpu

_LANES = 128


def _round_up(a, m):
    return ((a + m - 1) // m) * m


def _vmem_limit(bytes_needed):
    # >= 32 MiB (covers the default tiles on all gens), <= 64 MiB (safe w.r.t.
    # v7x's 64 MiB physical VMEM; v5e/v6e have 128 MiB physical).
    return int(min(max(32 * 1024 * 1024, bytes_needed + (2 << 20)), 64 * 1024 * 1024))


# ---------------------------------------------------------------------------
# Fast path: F | 128.  x repacked to (N/G, G*F); block-diag MXU matmul.
# ---------------------------------------------------------------------------
def _packed_kernel(x_ref, w_ref, b_ref, o_ref):
    # x_ref: (TR, G*F) VMEM; w_ref: (G*F, G) VMEM block-diag weight;
    # b_ref: (1, 1) SMEM f32; o_ref: (TR, G) VMEM.
    x = x_ref[...].astype(jnp.float32)
    # (TR, 128) . (128, G): LHS lane dim contracted -> no transpose of the big
    # tile.  Mosaic's f32 MXU path uses multi-pass accumulation in f32.
    z = jnp.dot(x, w_ref[...], preferred_element_type=jnp.float32)
    o_ref[...] = jax.nn.sigmoid(z + b_ref[0, 0]).astype(o_ref.dtype)


def _linear_sigmoid_packed(x, w32, b, *, block_rows):
    n, f = x.shape
    g = _LANES // f                      # original rows packed per 128-lane row
    n_pad = _round_up(n, g)
    if n_pad != n:                       # at most g-1 zero rows; no-op otherwise
        x = jnp.pad(x, ((0, n_pad - n), (0, 0)))
    r = n_pad // g
    x_rep = x.reshape(r, g * f)          # free, contiguous reshape (lane-dense rows)

    # Block-diagonal weight (g*f, g): column j holds w in rows [j*f, (j+1)*f).
    w_blk = jnp.kron(jnp.eye(g, dtype=jnp.float32), w32.reshape(f, 1))

    # Row tile of the packed array.  Keep >= 2 grid steps where possible so
    # v7x's two TensorCores both get work on the "parallel" axis.
    tr_cap = max(block_rows // g, 8)
    if r > 16 and r > tr_cap:
        tr = _round_up(tr_cap, 8)
        if tr >= r:
            tr = r
    elif r > 16:
        tr = _round_up(pl.cdiv(r, 2), 8)     # split a single-step grid in two
        if tr >= r:
            tr = r
    else:
        tr = r                                # tiny problem: one full block

    itemsize = jnp.dtype(x.dtype).itemsize
    cost = pl.CostEstimate(
        flops=2 * n_pad * f,
        transcendentals=n_pad,
        bytes_accessed=n_pad * f * itemsize + n_pad * itemsize,
    )
    # 2 x-buffers + 2 out-buffers (out tile lane-padded to 128) + slack.
    vmem_bytes = 4 * tr * _LANES * 4

    out = pl.pallas_call(
        _packed_kernel,
        out_shape=jax.ShapeDtypeStruct((r, g), x.dtype),
        grid=(pl.cdiv(r, tr),),
        in_specs=[
            pl.BlockSpec((tr, g * f), lambda i: (i, 0)),         # packed x tile
            pl.BlockSpec((g * f, g), lambda i: (0, 0)),          # block-diag weight
            pl.BlockSpec(memory_space=pltpu.MemorySpace.SMEM),   # bias scalar
        ],
        out_specs=pl.BlockSpec((tr, g), lambda i: (i, 0)),
        compiler_params=pltpu.CompilerParams(
            dimension_semantics=("parallel",),
            vmem_limit_bytes=_vmem_limit(vmem_bytes),
        ),
        cost_estimate=cost,
    )(x_rep, w_blk, b)
    # (r, g) row-major == original row order; drop padded rows.
    return out.reshape(n_pad, 1)[:n]


# ---------------------------------------------------------------------------
# Generic fallback (any F): (TN, F) x (1, F) -> lane-dense (1, TN) row.
# ---------------------------------------------------------------------------
def _rowtile_kernel(x_ref, w_ref, b_ref, o_ref):
    x = x_ref[...].astype(jnp.float32)
    z = jax.lax.dot_general(
        w_ref[...], x,
        dimension_numbers=(((1,), (1,)), ((), ())),
        preferred_element_type=jnp.float32,
    )
    o_ref[...] = jax.nn.sigmoid(z + b_ref[0, 0]).astype(o_ref.dtype)


def _linear_sigmoid_rowtile(x, w32, b, *, block_rows):
    n, f = x.shape
    block_rows = max(_round_up(block_rows, 128), 128)
    tn = n if n <= block_rows else block_rows
    itemsize = jnp.dtype(x.dtype).itemsize
    cost = pl.CostEstimate(
        flops=2 * n * f,
        transcendentals=n,
        bytes_accessed=n * f * itemsize + n * itemsize,
    )
    vmem_bytes = 2 * tn * _round_up(f, _LANES) * 4
    out = pl.pallas_call(
        _rowtile_kernel,
        out_shape=jax.ShapeDtypeStruct((1, n), x.dtype),
        grid=(pl.cdiv(n, tn),),
        in_specs=[
            pl.BlockSpec((tn, f), lambda i: (i, 0)),
            pl.BlockSpec((1, f), lambda i: (0, 0)),
            pl.BlockSpec(memory_space=pltpu.MemorySpace.SMEM),
        ],
        out_specs=pl.BlockSpec((1, tn), lambda i: (0, i)),
        compiler_params=pltpu.CompilerParams(
            dimension_semantics=("parallel",),
            vmem_limit_bytes=_vmem_limit(vmem_bytes),
        ),
        cost_estimate=cost,
    )(x, w32, b)
    return out.reshape(n, 1)


def linear_sigmoid(x, weight, bias, *, block_rows=32768):
    """Pallas TPU equivalent of torch.sigmoid(nn.Linear(F, 1)(x)).

    block_rows: original rows of x processed per grid step (default 32768 ->
    ~4 MiB of x per step on the packed path, well past the per-step overhead).
    """
    n, f = x.shape
    assert weight.shape == (1, f)
    w32 = weight.astype(jnp.float32)             # keep torch's f32 weight semantics
    b = bias.reshape(1, 1).astype(jnp.float32)   # SMEM scalar
    if f < _LANES and _LANES % f == 0:
        return _linear_sigmoid_packed(x, w32, b, block_rows=block_rows)
    return _linear_sigmoid_rowtile(x, w32, b, block_rows=block_rows)


def init_params(key, n_input_features, dtype=jnp.float32):
    """Matches nn.Linear's default init U(-1/sqrt(F), 1/sqrt(F))."""
    kw, kb = jax.random.split(key)
    bound = 1.0 / math.sqrt(n_input_features)
    weight = jax.random.uniform(
        kw, (1, n_input_features), dtype, minval=-bound, maxval=bound
    )
    bias = jax.random.uniform(kb, (1,), dtype, minval=-bound, maxval=bound)
    return weight, bias


def _reference(x, weight, bias):
    return jax.nn.sigmoid(
        x.astype(jnp.float32) @ weight.astype(jnp.float32).T
        + bias.astype(jnp.float32)
    )


if __name__ == "__main__":
    key = jax.random.PRNGKey(0)
    kx1, kx2, kx3, kx4, kp1, kp2 = jax.random.split(key, 6)

    n_features = 32
    weight, bias = init_params(kp1, n_features)
    # Tolerance leaves headroom for MXU bf16-pass accumulation; real packing /
    # indexing bugs produce O(0.1-1) errors and are still caught.
    tol = dict(atol=2e-3, rtol=0)

    # 1) Tiny case matching the module's toy usage (single block, packed path).
    x_small = jax.random.normal(kx1, (8, n_features), jnp.float32)
    y = jax.block_until_ready(linear_sigmoid(x_small, weight, bias))
    assert y.shape == (8, 1)
    assert jnp.allclose(y, _reference(x_small, weight, bias), **tol)

    # 2) Multi-step "parallel" grid on the packed path (small block to force it).
    x_big = jax.random.normal(kx2, (2000, n_features), jnp.float32)
    y = jax.block_until_ready(linear_sigmoid(x_big, weight, bias, block_rows=1024))
    assert y.shape == (2000, 1)
    assert jnp.allclose(y, _reference(x_big, weight, bias), **tol)

    # 3) Ragged N (not a multiple of the pack factor) -> wrapper pads + slices.
    x_rag = jax.random.normal(kx3, (1003, n_features), jnp.float32)
    y = jax.block_until_ready(linear_sigmoid(x_rag, weight, bias))
    assert y.shape == (1003, 1)
    assert jnp.allclose(y, _reference(x_rag, weight, bias), **tol)

    # 4) Feature width that does not divide 128 -> generic row-tile fallback.
    w2, b2 = init_params(kp2, 48)
    x_gen = jax.random.normal(kx4, (64, 48), jnp.float32)
    y = jax.block_until_ready(linear_sigmoid(x_gen, w2, b2))
    assert y.shape == (64, 1)
    assert jnp.allclose(y, _reference(x_gen, w2, b2), **tol)

    print("KERNEL_OK")
</pallas_src>

<mosaic_0001>
module attributes {stable_mosaic.version = 11 : i64} {
  func.func @_packed_kernel(%arg0: i32, %arg1: memref<2x128xf32, #tpu.memory_space<vmem>>, %arg2: memref<128x4xf32, #tpu.memory_space<vmem>>, %arg3: memref<1x1xf32, #tpu.memory_space<smem>>, %arg4: memref<2x4xf32, #tpu.memory_space<vmem>>) attributes {dimension_semantics = [#tpu.dimension_semantics<parallel>], iteration_bounds = array<i64: 1>, scalar_prefetch = 0 : i64, scratch_operands = 0 : i64, tpu.core_type = #tpu.core_type<tc>, window_params = [{transform_indices = @transform_0, window_bounds = array<i64: 2, 128>}, {pipeline_mode = #tpu.pipeline_mode<synchronous>, transform_indices = @transform_1, window_bounds = array<i64: 128, 4>}, {transform_indices = @transform_2, window_bounds = array<i64: 1, 1>}, {transform_indices = @transform_3, window_bounds = array<i64: 2, 4>}]} {
    %c0 = arith.constant 0 : index
    %c0_0 = arith.constant 0 : index
    %0 = vector.load %arg1[%c0, %c0_0] : memref<2x128xf32, #tpu.memory_space<vmem>>, vector<2x128xf32>
    %c0_1 = arith.constant 0 : index
    %c0_2 = arith.constant 0 : index
    %1 = vector.load %arg2[%c0_1, %c0_2] : memref<128x4xf32, #tpu.memory_space<vmem>>, vector<128x4xf32>
    %cst = arith.constant dense<0.000000e+00> : vector<2x4xf32>
    %2 = tpu.matmul %0, %1, %cst {dimension_numbers = #tpu.dot_dimension_numbers<[1], [0], [0], [1], [0, 0, 1, 1], [], []>} : vector<2x128xf32>, vector<128x4xf32>, vector<2x4xf32> -> vector<2x4xf32>
    %c0_3 = arith.constant 0 : index
    %c0_4 = arith.constant 0 : index
    %3 = memref.load %arg3[%c0_3, %c0_4] : memref<1x1xf32, #tpu.memory_space<smem>>
    %4 = vector.broadcast %3 : f32 to vector<2x4xf32>
    %5 = arith.addf %2, %4 : vector<2x4xf32>
    %6 = arith.negf %5 : vector<2x4xf32>
    %7 = math.exp %6 : vector<2x4xf32>
    %cst_5 = arith.constant 1.000000e+00 : f32
    %8 = vector.broadcast %cst_5 : f32 to vector<2x4xf32>
    %9 = arith.addf %8, %7 : vector<2x4xf32>
    %10 = arith.divf %8, %9 : vector<2x4xf32>
    %c0_6 = arith.constant 0 : index
    %c0_7 = arith.constant 0 : index
    %11 = vector.load %arg4[%c0_6, %c0_7] : memref<2x4xf32, #tpu.memory_space<vmem>>, vector<2x4xf32>
    tpu.vector_store %arg4[%c0_6, %c0_7], %10 {strides = array<i32>} : memref<2x4xf32, #tpu.memory_space<vmem>>, vector<2x4xf32>,
    return
  }
  func.func @transform_0(%arg0: i32) -> (i32, i32) {
    %c0_i32 = arith.constant 0 : i32
    %c0_i32_0 = arith.constant 0 : i32
    return %arg0, %c0_i32 : i32, i32
  }
  func.func @transform_1(%arg0: i32) -> (i32, i32) {
    %c0_i32 = arith.constant 0 : i32
    %c0_i32_0 = arith.constant 0 : i32
    %c0_i32_1 = arith.constant 0 : i32
    return %c0_i32, %c0_i32_0 : i32, i32
  }
  func.func @transform_2(%arg0: i32) -> (i32, i32) {
    %c0_i32 = arith.constant 0 : i32
    %c0_i32_0 = arith.constant 0 : i32
    %c0_i32_1 = arith.constant 0 : i32
    return %c0_i32, %c0_i32_0 : i32, i32
  }
  func.func @transform_3(%arg0: i32) -> (i32, i32) {
    %c0_i32 = arith.constant 0 : i32
    %c0_i32_0 = arith.constant 0 : i32
    return %arg0, %c0_i32 : i32, i32
  }
}

</mosaic_0001>

<bundles_post_ra>
// kernel: tpu_custom_call.1
= control target key start
LH: loop header
LB: loop body
LE: loop exit
PB: predicated region body
PF: predicated region fallthrough
CT: control target
= control target key end

     0   :  { %v236_v3 = vmov 0.0|0.0   ;;  %vm237_vm0 = vmmov 0   ;;  %v238_v6 = vmov 0.0   ;;  %s326_s0 = inlined_call_operand.vmem [shape: f32[2,128], index: 0, kind: input, shape index: {}]   ;;  %s327_s1 = inlined_call_operand.vmem [shape: f32[128,4], index: 1, kind: input, shape index: {}]   ;;  %s328_s2 = inlined_call_operand.<no memory space> [shape: f32[1,1], index: 2, kind: input, shape index: {}]   ;;  %s329_s3 = inlined_call_operand.hbm [shape: f32[2,4], index: 3, kind: output, shape index: {}]  }
   0x1   :  { %v17_v0 = vld [vmem:[%s327_s1] sm:$0xff]  ;;  %v18_v1 = vld [vmem:[%s327_s1 + $0x8] sm:$0xff]  ;;  %v19_v2 = vld [vmem:[%s327_s1 + $0x10] sm:$0xff]  ;;  %180 = vmatprep.subr.bf16.mxu0 %v236_v3  ;;  %177 = vmatprep.mubr.msk.f32.mxu0 %vm237_vm0, %v238_v6 }
   0x2   :  { %v181_v4 = vpack.c.bf16 %v18_v1, %v17_v0  ;;  %v20_v5 = vld [vmem:[%s327_s1 + $0x18] sm:$0xff]  ;;  %v21_v8 = vld [vmem:[%s327_s1 + $0x20] sm:$0xff]  ;;  %v22_v9 = vld [vmem:[%s327_s1 + $0x28] sm:$0xff] }
   0x3   :  { %v184_v7 = vpack.c.bf16 %v20_v5, %v19_v2 }
   0x4   :  { %182 = vmatpush3.bf16.msra.mxu0 %v181_v4 }
   0x5   :  { %183 = vmatprep.subr.bf16.mxu0 %v236_v3 }
   0x6   :  { %9 = vsyncpa [#allocation4], 0  ;;  %v187_v10 = vpack.c.bf16 %v22_v9, %v21_v8  ;;  %v23_v11 = vld [vmem:[%s327_s1 + $0x30] sm:$0xff]  ;;  %v24_v12 = vld [vmem:[%s327_s1 + $0x38] sm:$0xff]  ;;  %v34_v27 = vstv %s328_s2  ;;  %vm111_vm1 = vcmask 25600  }
   0x7   :  { %v190_v13 = vpack.c.bf16 %v24_v12, %v23_v11  ;;  %v25_v14 = vld [vmem:[%s327_s1 + $0x40] sm:$0xff]  ;;  %v26_v15 = vld [vmem:[%s327_s1 + $0x48] sm:$0xff]  ;;  %v27_v17 = vld [vmem:[%s327_s1 + $0x50] sm:$0xff] }
   0x8   :  { %185 = vmatpush3.bf16.msra.mxu0 %v184_v7  ;;  %v193_v16 = vpack.c.bf16 %v26_v15, %v25_v14  ;;  %v28_v18 = vld [vmem:[%s327_s1 + $0x58] sm:$0xff]  ;;  %v29_v20 = vld [vmem:[%s327_s1 + $0x60] sm:$0xff]  ;;  %v30_v21 = vld [vmem:[%s327_s1 + $0x68] sm:$0xff] }
   0x9   :  { %186 = vmatprep.subr.bf16.mxu0 %v236_v3  ;;  %v196_v19 = vpack.c.bf16 %v28_v18, %v27_v17  ;;  %v199_v22 = vpack.c.bf16 %v30_v21, %v29_v20  ;;  %v31_v23 = vld [vmem:[%s327_s1 + $0x70] sm:$0xff]  ;;  %v32_v24 = vld [vmem:[%s327_s1 + $0x78] sm:$0xff]  ;;  %v16_v26 = vld [vmem:[%s326_s0] sm:$0x3]  ;;  %s239_s1 = smov [#allocation3]  }
   0xa   :  { %v202_v25 = vpack.c.bf16 %v32_v24, %v31_v23  ;;  %s119_s21 = sshll.u32 %s239_s1, 4  ;;  %s120_s21 = int_to_ptr.vmem [resolvable:$true] %s119_s21 }
   0xb   :  { %s212_s0 = scalar_lea.vmem %s120_s21, 32  ;;  %p217_p1 = scmp.lt.s32.totalorder %s120_s21, %s120_s21 }
   0xc   :  { %188 = vmatpush3.bf16.msra.mxu0 %v187_v10  ;;  %p213_p0 = scmp.ne.s32.totalorder %s120_s21, %s212_s0  ;;  %p218_p2 = scmp.lt.s32.totalorder %s212_s0, %s212_s0 }
   0xd   :  { %189 = vmatprep.subr.bf16.mxu0 %v236_v3 }
   0xe   :  { %p219_p3 = por %p218_p2, %p217_p1 }
  0x10   :  { %191 = vmatpush3.bf16.msra.mxu0 %v190_v13  ;;  %p220_p4 = pnand %p219_p3, %p213_p0 }
  0x11   :  { %192 = vmatprep.subr.bf16.mxu0 %v236_v3 }
  0x14   :  { %194 = vmatpush3.bf16.msra.mxu0 %v193_v16 }
  0x15   :  { %195 = vmatprep.subr.bf16.mxu0 %v236_v3 }
  0x18   :  { %197 = vmatpush3.bf16.msra.mxu0 %v196_v19 }
  0x19   :  { %198 = vmatprep.subr.bf16.mxu0 %v236_v3 }
  0x1c   :  { %200 = vmatpush3.bf16.msra.mxu0 %v199_v22 }
  0x1d   :  { %201 = vmatprep.subr.bf16.mxu0 %v236_v3 }
  0x20   :  { %203 = vmatpush3.bf16.msra.mxu0 %v202_v25 }
  0x23   :  { %178 = vmatmul.mubr.f32.vlgmr.msra.gmra.mrb[0].mxu0 %v16_v26 }
  0xf6   :  { %v101_v28 = vpop.f32.mrb[0].mxu0 }
  0xf7   :  { %v102_v29 = vadd.f32 %v101_v28, %v34_v27  ;;  %v179_v30 = vpop.f32.mrb[1].mxu0 }
  0xf9   :  { %v127_v31 = vmul.f32 -1.442695, %v102_v29 }
  0xfb   :  { %208 = vpow2.f32 %v127_v31 }
 0x105   :  { %v209_v32 = vpop.eup %208 }
 0x106   :  { %v108_v33 = vadd.f32 1.0, %v209_v32 }
 0x108   :  { %210 = vrcp.f32 %v108_v33 }
 0x112   :  { %v211_v34 = vpop.eup %210 }
 0x113   :  { %112 = vst.msk [vmem:[#allocation3] sm:$0x3] %vm111_vm1, %v211_v34 }
 0x114   :  { %223 = shalt.err (!%p220_p4)
}
 0x115   :  { %s224_s23 = scalar_lea.hbm %s329_s3, 32 }
 0x116   :  { %p225_p5 = scmp.ne.s32.totalorder %s329_s3, %s224_s23  ;;  %p228_p6 = scmp.lt.u32.totalorder %s224_s23, %s329_s3 }
 0x118   :  { %p230_p7 = pnand %p228_p6, %p225_p5 }
 0x11a   :  { %233 = shalt.err (!%p230_p7)
}
 0x11b   :  { %122 = dma.vmem_to_hbm [thread:$0]  %s120_s21, 32, %s329_s3, [#allocation4]  }
 0x11c   :  { %234 = dma.done.wait [#allocation4], 32  }
 0x11d   :  { %235 = vsyncadd [#allocation4], 4294967264 }
 0x11e   :  { %126 = vsyncpa [#allocation4], 1 }

</bundles_post_ra>
